<compile_context>
chip_gen: v6e
topology: v6e:2x2x1
jax: 0.10.0
libtpu: 0.0.40
codegen_flags: <defaults>
</compile_context>

<pallas_src>
import functools

import jax
import jax.numpy as jnp
from jax import lax
from jax.experimental import pallas as pl
from jax.experimental.pallas import tpu as pltpu


# ------------------------------- helpers ----------------------------------- #

def _pick_row_tile(total, cap, sublane_mult=False):
    """Largest tile <= cap that divides `total` (optionally a multiple of 8,
    required when the tile lands on the second-to-last block dim)."""
    cap = max(1, min(cap, total))
    for cand in range(cap, 0, -1):
        if total % cand:
            continue
        if sublane_mult and cand % 8 != 0 and cand != total:
            continue
        return cand
    return total


def _vmem_limit_bytes(block_bytes):
    """Scoped-VMEM limit from the actual (double-buffered) block footprint."""
    need = 2 * int(block_bytes)                       # auto-pipeline double buffers
    limit = max(32 * 2 ** 20, need + need // 2 + 8 * 2 ** 20)
    try:
        cap = int(getattr(pltpu.get_tpu_info(), "vmem_capacity_bytes",
                          128 * 2 ** 20))
    except Exception:
        cap = 128 * 2 ** 20
    return int(min(limit, max(32 * 2 ** 20, (cap * 9) // 10)))


# ----------------------------- Pallas kernels ------------------------------ #

def _fused_flat_kernel(x_ref, wtap_ref, b1_ref, wbig_ref, b2_ref, o_ref, *,
                       ksize, stride, th, c_in, wflat_in):
    """Fused DW-conv + BN + SiLU + 1x1-conv + BN + SiLU, lane-dense layout.

    x_ref:    (1, Hp, Wp*C_in)        padded input, W and C flattened on lanes
    wtap_ref: (K*K, W1*C_in)          depthwise taps (BN1 scale folded, W-tiled)
    b1_ref:   (1, W1*C_in)            folded BN1 bias
    wbig_ref: (W1*C_in, Wopad*C_out)  bf16 kron(S, w_pw*scale2): 1x1 conv plus
                                      W-stride selection as one MXU matmul
    b2_ref:   (1, Wopad*C_out)        folded BN2 bias (zero padded)
    o_ref:    (1, th, Wopad*C_out)    lane-dense output row tile
    """
    t = pl.program_id(1)
    r0 = t * th                                     # first output row of this tile
    wtaps = wtap_ref[...].astype(jnp.float32)

    if stride == 1:
        # Load the input row slab once (single f32 cast) and hoist the K
        # lane-misaligned shifts out of the kh loop (K extracts, not K*K).
        xblk = x_ref[0, pl.ds(r0, th + ksize - 1), :].astype(jnp.float32)
        acc = jnp.zeros((th, wflat_in), jnp.float32)
        for kw in range(ksize):
            xs_kw = xblk[:, kw * c_in:kw * c_in + wflat_in]
            for kh in range(ksize):
                tap = kh * ksize + kw
                acc = acc + xs_kw[kh:kh + th, :] * wtaps[tap:tap + 1, :]
        y = acc
    else:
        # stride > 1: compute only the needed output rows (input rows
        # r*stride + kh); the W subsampling is folded into wbig_ref.
        rows = []
        for i in range(th):
            racc = jnp.zeros((1, wflat_in), jnp.float32)
            for kh in range(ksize):
                xrow = x_ref[0, pl.ds((r0 + i) * stride + kh, 1),
                             :].astype(jnp.float32)
                for kw in range(ksize):
                    tap = kh * ksize + kw
                    racc = racc + xrow[:, kw * c_in:kw * c_in + wflat_in] \
                        * wtaps[tap:tap + 1, :]
            rows.append(racc)
        y = jnp.concatenate(rows, axis=0)

    # BN1 (scale folded into taps) + SiLU.
    y = y + b1_ref[...].astype(jnp.float32)
    y = y * jax.nn.sigmoid(y)
    # Pointwise 1x1 conv (+ W-stride selection) as one lane-dense bf16 MXU matmul.
    z = jnp.dot(y.astype(jnp.bfloat16), wbig_ref[...],
                preferred_element_type=jnp.float32)
    z = z + b2_ref[...].astype(jnp.float32)
    z = z * jax.nn.sigmoid(z)
    o_ref[0, :, :] = z.astype(o_ref.dtype)


def _fused_nhwc_kernel(x_ref, wdw_ref, b1_ref, wpw_ref, b2_ref, o_ref, *,
                       ksize, th, w_out, c_in, c_out):
    """Fused fallback for larger channel counts (NHWC, stride 1), row-blocked.

    x_ref: (1, Hp, Wp, C_in)   wdw_ref: (K, K, C_in)   b1_ref: (1, C_in)
    wpw_ref: (C_in, C_out) bf16   b2_ref: (1, C_out)   o_ref: (1, th, Wo, C_out)
    """
    t = pl.program_id(1)
    r0 = t * th
    wdw = wdw_ref[...].astype(jnp.float32)

    acc = jnp.zeros((th, w_out, c_in), jnp.float32)
    for kh in range(ksize):
        slab = x_ref[0, pl.ds(r0 + kh, th), :, :].astype(jnp.float32)
        for kw in range(ksize):
            acc = acc + slab[:, kw:kw + w_out, :] * wdw[kh, kw]
    y = acc + b1_ref[...].astype(jnp.float32)
    y = y * jax.nn.sigmoid(y)
    # Row-blocked pointwise conv: one bf16 MXU matmul per tile (M = th*Wo).
    y2 = y.reshape(th * w_out, c_in).astype(jnp.bfloat16)
    z = jnp.dot(y2, wpw_ref[...], preferred_element_type=jnp.float32)
    z = z + b2_ref[...].astype(jnp.float32)
    z = z * jax.nn.sigmoid(z)
    o_ref[0, :, :, :] = z.reshape(th, w_out, c_out).astype(o_ref.dtype)


# ------------------------------- wrapper ----------------------------------- #

def dwconv_pallas(x_nchw, w_dw_t, bn1, w_pw_t, bn2, *, ksize, stride=1,
                  eps=1e-5, force_nhwc=False):
    """DWConv.forward (inference).  x_nchw: (N,C_in,H,W) -> (N,C_out,Ho,Wo)."""
    g1, be1, m1, v1 = bn1
    g2, be2, m2, v2 = bn2
    scale1 = g1 / jnp.sqrt(v1 + eps)
    bias1 = be1 - m1 * scale1
    scale2 = g2 / jnp.sqrt(v2 + eps)
    bias2 = be2 - m2 * scale2
    w_dw = jnp.transpose(w_dw_t[:, 0], (1, 2, 0)) * scale1               # (K,K,Cin)
    w_pw = jnp.transpose(w_pw_t[:, :, 0, 0], (1, 0)) * scale2[None, :]   # (Cin,Cout)

    # NCHW -> NHWC + zero halo.
    # TODO(synk): keep activations NHWC end-to-end across the model and handle
    # the zero halo in-kernel (masked border taps) to remove these HBM passes.
    x = jnp.transpose(x_nchw, (0, 2, 3, 1))
    n, h, w, c_in = x.shape
    c_out = w_pw.shape[-1]
    pad = (ksize - 1) // 2
    xp = jnp.pad(x, ((0, 0), (pad, pad), (pad, pad), (0, 0)))
    hp, wp = h + 2 * pad, w + 2 * pad
    h1, w1 = hp - ksize + 1, wp - ksize + 1                    # stride-1 dims
    ho, wo = (hp - ksize) // stride + 1, (wp - ksize) // stride + 1
    itemsize = jnp.dtype(x.dtype).itemsize

    # Lane-dense flattened path only for small channel counts (the block
    # diagonal 1x1 weight stays small); larger C goes to the NHWC path.
    use_flat = (not force_nhwc) and (c_in <= 16) and (w1 * c_in <= 512) \
        and (wo * c_out <= 1024)

    if use_flat:
        wflat_in = w1 * c_in
        flat_out = wo * c_out
        flat_out_pad = ((flat_out + 127) // 128) * 128        # unmasked vst
        th = _pick_row_tile(ho, 8, sublane_mult=True)
        nt = ho // th

        xp_flat = xp.reshape(n, hp, wp * c_in)                 # free reshape
        w_taps = jnp.tile(w_dw.reshape(ksize * ksize, 1, c_in),
                          (1, w1, 1)).reshape(ksize * ksize, wflat_in)
        b1_flat = jnp.tile(bias1, w1).reshape(1, wflat_in)
        # 1x1 conv + W-stride subsampling as one matmul: kron(S, w_pw) with S
        # the (W1, Wo) column-selection matrix (identity when stride == 1).
        sel = (jnp.arange(w1)[:, None] == stride * jnp.arange(wo)[None, :])
        w_big = jnp.kron(sel.astype(w_pw.dtype), w_pw)
        w_big = jnp.pad(w_big, ((0, 0), (0, flat_out_pad - flat_out)))
        w_big = w_big.astype(jnp.bfloat16)
        b2_flat = jnp.pad(jnp.tile(bias2, wo),
                          (0, flat_out_pad - flat_out)).reshape(1, flat_out_pad)

        block_bytes = (hp * wp * c_in * itemsize
                       + (ksize * ksize + 1) * wflat_in * 4
                       + wflat_in * flat_out_pad * 2 + flat_out_pad * 4
                       + th * flat_out_pad * itemsize)
        cparams = pltpu.CompilerParams(
            dimension_semantics=("parallel", "parallel"),
            vmem_limit_bytes=_vmem_limit_bytes(block_bytes))

        out_flat = pl.pallas_call(
            functools.partial(_fused_flat_kernel, ksize=ksize, stride=stride,
                              th=th, c_in=c_in, wflat_in=wflat_in),
            out_shape=jax.ShapeDtypeStruct((n, ho, flat_out_pad), x.dtype),
            grid=(n, nt),
            in_specs=[
                # Full padded image; constant along the H-tile axis so it stays
                # resident in VMEM and is only re-DMA'd when b changes.
                pl.BlockSpec((1, hp, wp * c_in), lambda b, t: (b, 0, 0)),
                # TODO(synk): single-buffer these grid-invariant operands via
                # pipeline_mode=pl.Buffered(1) to save VMEM on v7x.
                pl.BlockSpec((ksize * ksize, wflat_in), lambda b, t: (0, 0)),
                pl.BlockSpec((1, wflat_in), lambda b, t: (0, 0)),
                pl.BlockSpec((wflat_in, flat_out_pad), lambda b, t: (0, 0)),
                pl.BlockSpec((1, flat_out_pad), lambda b, t: (0, 0)),
            ],
            out_specs=pl.BlockSpec((1, th, flat_out_pad),
                                   lambda b, t: (b, t, 0)),
            compiler_params=cparams,
        )(xp_flat, w_taps, b1_flat, w_big, b2_flat)
        out_nhwc = out_flat[:, :, :flat_out].reshape(n, ho, wo, c_out)
    else:
        # NHWC fallback (larger C): row-blocked, computes the stride-1 output.
        # TODO(synk): tile the input over H with a (K-1)-row halo via manual
        # DMA (pl.ANY + make_async_copy) so VMEM stays bounded for very large
        # feature maps on v7x, and handle stride in-kernel here as well.
        acc_budget = 64 * 1024                       # keep the f32 accumulator small
        cap = max(1, min(8, acc_budget // max(1, w1 * c_in * 4)))
        if w1 % 8 != 0:
            cap = 1                                  # keep the in-kernel reshape trivial
        th = _pick_row_tile(h1, cap)
        nt = h1 // th

        block_bytes = (hp * wp * c_in * itemsize
                       + ksize * ksize * c_in * 4 + c_in * 4
                       + c_in * c_out * 2 + c_out * 4
                       + th * w1 * c_out * itemsize)
        cparams = pltpu.CompilerParams(
            dimension_semantics=("parallel", "parallel"),
            vmem_limit_bytes=_vmem_limit_bytes(block_bytes))

        out_nhwc = pl.pallas_call(
            functools.partial(_fused_nhwc_kernel, ksize=ksize, th=th,
                              w_out=w1, c_in=c_in, c_out=c_out),
            out_shape=jax.ShapeDtypeStruct((n, h1, w1, c_out), x.dtype),
            grid=(n, nt),
            in_specs=[
                pl.BlockSpec((1, hp, wp, c_in), lambda b, t: (b, 0, 0, 0)),
                pl.BlockSpec((ksize, ksize, c_in), lambda b, t: (0, 0, 0)),
                pl.BlockSpec((1, c_in), lambda b, t: (0, 0)),
                pl.BlockSpec((c_in, c_out), lambda b, t: (0, 0)),
                pl.BlockSpec((1, c_out), lambda b, t: (0, 0)),
            ],
            out_specs=pl.BlockSpec((1, th, w1, c_out),
                                   lambda b, t: (b, t, 0, 0)),
            compiler_params=cparams,
        )(xp, w_dw, bias1.reshape(1, -1), w_pw.astype(jnp.bfloat16),
          bias2.reshape(1, -1))
        if stride > 1:
            # Exact: the 1x1 conv / BN / SiLU commute with spatial subsampling.
            out_nhwc = out_nhwc[:, ::stride, ::stride, :]

    return jnp.transpose(out_nhwc, (0, 3, 1, 2))      # NHWC -> NCHW


# ------------------------- pure-JAX reference ------------------------------ #

def _bn_nchw(x, gamma, beta, mean, var, eps):
    inv = gamma / jnp.sqrt(var + eps)
    return (x - mean[None, :, None, None]) * inv[None, :, None, None] \
        + beta[None, :, None, None]


def dwconv_reference(x, w_dw_t, bn1, w_pw_t, bn2, *, ksize, stride, eps=1e-5):
    pad = (ksize - 1) // 2
    y = lax.conv_general_dilated(
        x, w_dw_t, (stride, stride), [(pad, pad), (pad, pad)],
        feature_group_count=x.shape[1],
        dimension_numbers=('NCHW', 'OIHW', 'NCHW'))
    y = _bn_nchw(y, *bn1, eps)
    y = y * jax.nn.sigmoid(y)
    z = lax.conv_general_dilated(
        y, w_pw_t, (1, 1), [(0, 0), (0, 0)],
        dimension_numbers=('NCHW', 'OIHW', 'NCHW'))
    z = _bn_nchw(z, *bn2, eps)
    z = z * jax.nn.sigmoid(z)
    return z


# --------------------------------- main ------------------------------------ #

if __name__ == "__main__":
    key = jax.random.PRNGKey(0)
    keys = jax.random.split(key, 12)

    N, C_IN, H, W = 2, 4, 16, 16
    C_OUT, KSIZE = 8, 3
    EPS = 1e-5

    x = jax.random.normal(keys[0], (N, C_IN, H, W), jnp.float32)

    # PyTorch-layout parameters (deterministic, synthetic).
    w_dw_t = 0.3 * jax.random.normal(keys[1], (C_IN, 1, KSIZE, KSIZE), jnp.float32)
    w_pw_t = 0.3 * jax.random.normal(keys[2], (C_OUT, C_IN, 1, 1), jnp.float32)

    g1 = 1.0 + 0.1 * jax.random.normal(keys[3], (C_IN,), jnp.float32)
    b1 = 0.1 * jax.random.normal(keys[4], (C_IN,), jnp.float32)
    m1 = 0.1 * jax.random.normal(keys[5], (C_IN,), jnp.float32)
    v1 = 0.5 + jnp.abs(jax.random.normal(keys[6], (C_IN,), jnp.float32))

    g2 = 1.0 + 0.1 * jax.random.normal(keys[7], (C_OUT,), jnp.float32)
    b2 = 0.1 * jax.random.normal(keys[8], (C_OUT,), jnp.float32)
    m2 = 0.1 * jax.random.normal(keys[9], (C_OUT,), jnp.float32)
    v2 = 0.5 + jnp.abs(jax.random.normal(keys[10], (C_OUT,), jnp.float32))

    bn1 = (g1, b1, m1, v1)
    bn2 = (g2, b2, m2, v2)

    # Validate: lane-dense flat path at stride 1 and 2 (in-kernel striding),
    # and the row-blocked NHWC fallback at stride 1 and 2.
    for stride, force_nhwc in ((1, False), (2, False), (1, True), (2, True)):
        out = dwconv_pallas(x, w_dw_t, bn1, w_pw_t, bn2,
                            ksize=KSIZE, stride=stride, eps=EPS,
                            force_nhwc=force_nhwc)
        out = jax.block_until_ready(out)
        ref = dwconv_reference(x, w_dw_t, bn1, w_pw_t, bn2,
                               ksize=KSIZE, stride=stride, eps=EPS)
        ref = jax.block_until_ready(ref)
        assert out.shape == ref.shape, (stride, force_nhwc, out.shape, ref.shape)
        err = float(jnp.max(jnp.abs(out - ref)))
        # bf16 MXU operands (f32 accumulation) -> slightly looser tolerance.
        assert jnp.allclose(out, ref, rtol=2e-2, atol=2e-2), \
            (stride, force_nhwc, err)

    print("KERNEL_OK")
</pallas_src>

<mosaic_0001>
module attributes {stable_mosaic.version = 11 : i64} {
  func.func @_fused_flat_kernel(%arg0: i32, %arg1: i32, %arg2: memref<1x18x72xf32, #tpu.memory_space<vmem>>, %arg3: memref<9x64xf32, #tpu.memory_space<vmem>>, %arg4: memref<1x64xf32, #tpu.memory_space<vmem>>, %arg5: memref<64x128xbf16, #tpu.memory_space<vmem>>, %arg6: memref<1x128xf32, #tpu.memory_space<vmem>>, %arg7: memref<1x8x128xf32, #tpu.memory_space<vmem>>) attributes {dimension_semantics = [#tpu.dimension_semantics<parallel>, #tpu.dimension_semantics<parallel>], iteration_bounds = array<i64: 2, 2>, scalar_prefetch = 0 : i64, scratch_operands = 0 : i64, tpu.core_type = #tpu.core_type<tc>, window_params = [{transform_indices = @transform_0, window_bounds = array<i64: 1, 18, 72>}, {pipeline_mode = #tpu.pipeline_mode<synchronous>, transform_indices = @transform_1, window_bounds = array<i64: 9, 64>}, {pipeline_mode = #tpu.pipeline_mode<synchronous>, transform_indices = @transform_2, window_bounds = array<i64: 1, 64>}, {pipeline_mode = #tpu.pipeline_mode<synchronous>, transform_indices = @transform_3, window_bounds = array<i64: 64, 128>}, {pipeline_mode = #tpu.pipeline_mode<synchronous>, transform_indices = @transform_4, window_bounds = array<i64: 1, 128>}, {transform_indices = @transform_5, window_bounds = array<i64: 1, 8, 128>}]} {
    %c8_i32 = arith.constant 8 : i32
    %0 = arith.muli %arg1, %c8_i32 : i32
    %c0 = arith.constant 0 : index
    %c0_0 = arith.constant 0 : index
    %1 = vector.load %arg3[%c0, %c0_0] : memref<9x64xf32, #tpu.memory_space<vmem>>, vector<9x64xf32>
    %c0_1 = arith.constant 0 : index
    %2 = arith.index_cast %0 : i32 to index
    %c0_2 = arith.constant 0 : index
    %3 = vector.load %arg2[%c0_1, %2, %c0_2] : memref<1x18x72xf32, #tpu.memory_space<vmem>>, vector<1x10x72xf32>
    %4 = vector.shape_cast %3 : vector<1x10x72xf32> to vector<10x72xf32>
    %cst = arith.constant 0.000000e+00 : f32
    %5 = vector.broadcast %cst : f32 to vector<8x64xf32>
    %6 = vector.extract_strided_slice %4 {offsets = [0, 0], sizes = [10, 64], strides = [1, 1]} : vector<10x72xf32> to vector<10x64xf32>
    %7 = vector.extract_strided_slice %6 {offsets = [0, 0], sizes = [8, 64], strides = [1, 1]} : vector<10x64xf32> to vector<8x64xf32>
    %8 = vector.extract_strided_slice %1 {offsets = [0, 0], sizes = [1, 64], strides = [1, 1]} : vector<9x64xf32> to vector<1x64xf32>
    %9 = vector.broadcast %8 : vector<1x64xf32> to vector<8x64xf32>
    %10 = arith.mulf %7, %9 : vector<8x64xf32>
    %11 = arith.addf %5, %10 : vector<8x64xf32>
    %12 = vector.extract_strided_slice %6 {offsets = [1, 0], sizes = [8, 64], strides = [1, 1]} : vector<10x64xf32> to vector<8x64xf32>
    %13 = vector.extract_strided_slice %1 {offsets = [3, 0], sizes = [1, 64], strides = [1, 1]} : vector<9x64xf32> to vector<1x64xf32>
    %14 = vector.broadcast %13 : vector<1x64xf32> to vector<8x64xf32>
    %15 = arith.mulf %12, %14 : vector<8x64xf32>
    %16 = arith.addf %11, %15 : vector<8x64xf32>
    %17 = vector.extract_strided_slice %6 {offsets = [2, 0], sizes = [8, 64], strides = [1, 1]} : vector<10x64xf32> to vector<8x64xf32>
    %18 = vector.extract_strided_slice %1 {offsets = [6, 0], sizes = [1, 64], strides = [1, 1]} : vector<9x64xf32> to vector<1x64xf32>
    %19 = vector.broadcast %18 : vector<1x64xf32> to vector<8x64xf32>
    %20 = arith.mulf %17, %19 : vector<8x64xf32>
    %21 = arith.addf %16, %20 : vector<8x64xf32>
    %22 = vector.extract_strided_slice %4 {offsets = [0, 4], sizes = [10, 64], strides = [1, 1]} : vector<10x72xf32> to vector<10x64xf32>
    %23 = vector.extract_strided_slice %22 {offsets = [0, 0], sizes = [8, 64], strides = [1, 1]} : vector<10x64xf32> to vector<8x64xf32>
    %24 = vector.extract_strided_slice %1 {offsets = [1, 0], sizes = [1, 64], strides = [1, 1]} : vector<9x64xf32> to vector<1x64xf32>
    %25 = vector.broadcast %24 : vector<1x64xf32> to vector<8x64xf32>
    %26 = arith.mulf %23, %25 : vector<8x64xf32>
    %27 = arith.addf %21, %26 : vector<8x64xf32>
    %28 = vector.extract_strided_slice %22 {offsets = [1, 0], sizes = [8, 64], strides = [1, 1]} : vector<10x64xf32> to vector<8x64xf32>
    %29 = vector.extract_strided_slice %1 {offsets = [4, 0], sizes = [1, 64], strides = [1, 1]} : vector<9x64xf32> to vector<1x64xf32>
    %30 = vector.broadcast %29 : vector<1x64xf32> to vector<8x64xf32>
    %31 = arith.mulf %28, %30 : vector<8x64xf32>
    %32 = arith.addf %27, %31 : vector<8x64xf32>
    %33 = vector.extract_strided_slice %22 {offsets = [2, 0], sizes = [8, 64], strides = [1, 1]} : vector<10x64xf32> to vector<8x64xf32>
    %34 = vector.extract_strided_slice %1 {offsets = [7, 0], sizes = [1, 64], strides = [1, 1]} : vector<9x64xf32> to vector<1x64xf32>
    %35 = vector.broadcast %34 : vector<1x64xf32> to vector<8x64xf32>
    %36 = arith.mulf %33, %35 : vector<8x64xf32>
    %37 = arith.addf %32, %36 : vector<8x64xf32>
    %38 = vector.extract_strided_slice %4 {offsets = [0, 8], sizes = [10, 64], strides = [1, 1]} : vector<10x72xf32> to vector<10x64xf32>
    %39 = vector.extract_strided_slice %38 {offsets = [0, 0], sizes = [8, 64], strides = [1, 1]} : vector<10x64xf32> to vector<8x64xf32>
    %40 = vector.extract_strided_slice %1 {offsets = [2, 0], sizes = [1, 64], strides = [1, 1]} : vector<9x64xf32> to vector<1x64xf32>
    %41 = vector.broadcast %40 : vector<1x64xf32> to vector<8x64xf32>
    %42 = arith.mulf %39, %41 : vector<8x64xf32>
    %43 = arith.addf %37, %42 : vector<8x64xf32>
    %44 = vector.extract_strided_slice %38 {offsets = [1, 0], sizes = [8, 64], strides = [1, 1]} : vector<10x64xf32> to vector<8x64xf32>
    %45 = vector.extract_strided_slice %1 {offsets = [5, 0], sizes = [1, 64], strides = [1, 1]} : vector<9x64xf32> to vector<1x64xf32>
    %46 = vector.broadcast %45 : vector<1x64xf32> to vector<8x64xf32>
    %47 = arith.mulf %44, %46 : vector<8x64xf32>
    %48 = arith.addf %43, %47 : vector<8x64xf32>
    %49 = vector.extract_strided_slice %38 {offsets = [2, 0], sizes = [8, 64], strides = [1, 1]} : vector<10x64xf32> to vector<8x64xf32>
    %50 = vector.extract_strided_slice %1 {offsets = [8, 0], sizes = [1, 64], strides = [1, 1]} : vector<9x64xf32> to vector<1x64xf32>
    %51 = vector.broadcast %50 : vector<1x64xf32> to vector<8x64xf32>
    %52 = arith.mulf %49, %51 : vector<8x64xf32>
    %53 = arith.addf %48, %52 : vector<8x64xf32>
    %c0_3 = arith.constant 0 : index
    %c0_4 = arith.constant 0 : index
    %54 = vector.load %arg4[%c0_3, %c0_4] : memref<1x64xf32, #tpu.memory_space<vmem>>, vector<1x64xf32>
    %55 = vector.broadcast %54 : vector<1x64xf32> to vector<8x64xf32>
    %56 = arith.addf %53, %55 : vector<8x64xf32>
    %57 = arith.negf %56 : vector<8x64xf32>
    %58 = math.exp %57 : vector<8x64xf32>
    %cst_5 = arith.constant 1.000000e+00 : f32
    %59 = vector.broadcast %cst_5 : f32 to vector<8x64xf32>
    %60 = arith.addf %59, %58 : vector<8x64xf32>
    %61 = arith.divf %59, %60 : vector<8x64xf32>
    %62 = arith.mulf %56, %61 : vector<8x64xf32>
    %63 = arith.truncf %62 : vector<8x64xf32> to vector<8x64xbf16>
    %c0_6 = arith.constant 0 : index
    %c0_7 = arith.constant 0 : index
    %64 = vector.load %arg5[%c0_6, %c0_7] : memref<64x128xbf16, #tpu.memory_space<vmem>>, vector<64x128xbf16>
    %cst_8 = arith.constant dense<0.000000e+00> : vector<8x128xf32>
    %65 = tpu.matmul %63, %64, %cst_8 {dimension_numbers = #tpu.dot_dimension_numbers<[1], [0], [0], [1], [0, 0, 1, 1], [], []>} : vector<8x64xbf16>, vector<64x128xbf16>, vector<8x128xf32> -> vector<8x128xf32>
    %c0_9 = arith.constant 0 : index
    %c0_10 = arith.constant 0 : index
    %66 = vector.load %arg6[%c0_9, %c0_10] : memref<1x128xf32, #tpu.memory_space<vmem>>, vector<1x128xf32>
    %67 = vector.broadcast %66 : vector<1x128xf32> to vector<8x128xf32>
    %68 = arith.addf %65, %67 : vector<8x128xf32>
    %69 = arith.negf %68 : vector<8x128xf32>
    %70 = math.exp %69 : vector<8x128xf32>
    %cst_11 = arith.constant 1.000000e+00 : f32
    %71 = vector.broadcast %cst_11 : f32 to vector<8x128xf32>
    %72 = arith.addf %71, %70 : vector<8x128xf32>
    %73 = arith.divf %71, %72 : vector<8x128xf32>
    %74 = arith.mulf %68, %73 : vector<8x128xf32>
    %c0_12 = arith.constant 0 : index
    %c0_13 = arith.constant 0 : index
    %c0_14 = arith.constant 0 : index
    %75 = vector.load %arg7[%c0_12, %c0_13, %c0_14] : memref<1x8x128xf32, #tpu.memory_space<vmem>>, vector<1x8x128xf32>
    %76 = vector.shape_cast %75 : vector<1x8x128xf32> to vector<8x128xf32>
    %77 = vector.shape_cast %74 : vector<8x128xf32> to vector<1x8x128xf32>
    tpu.vector_store %arg7[%c0_12, %c0_13, %c0_14], %77 {strides = array<i32>} : memref<1x8x128xf32, #tpu.memory_space<vmem>>, vector<1x8x128xf32>,
    return
  }
  func.func @transform_0(%arg0: i32, %arg1: i32) -> (i32, i32, i32) {
    %c0_i32 = arith.constant 0 : i32
    %c0_i32_0 = arith.constant 0 : i32
    %c0_i32_1 = arith.constant 0 : i32
    return %arg0, %c0_i32, %c0_i32_0 : i32, i32, i32
  }
  func.func @transform_1(%arg0: i32, %arg1: i32) -> (i32, i32) {
    %c0_i32 = arith.constant 0 : i32
    %c0_i32_0 = arith.constant 0 : i32
    %c0_i32_1 = arith.constant 0 : i32
    return %c0_i32, %c0_i32_0 : i32, i32
  }
  func.func @transform_2(%arg0: i32, %arg1: i32) -> (i32, i32) {
    %c0_i32 = arith.constant 0 : i32
    %c0_i32_0 = arith.constant 0 : i32
    %c0_i32_1 = arith.constant 0 : i32
    return %c0_i32, %c0_i32_0 : i32, i32
  }
  func.func @transform_3(%arg0: i32, %arg1: i32) -> (i32, i32) {
    %c0_i32 = arith.constant 0 : i32
    %c0_i32_0 = arith.constant 0 : i32
    %c0_i32_1 = arith.constant 0 : i32
    return %c0_i32, %c0_i32_0 : i32, i32
  }
  func.func @transform_4(%arg0: i32, %arg1: i32) -> (i32, i32) {
    %c0_i32 = arith.constant 0 : i32
    %c0_i32_0 = arith.constant 0 : i32
    %c0_i32_1 = arith.constant 0 : i32
    return %c0_i32, %c0_i32_0 : i32, i32
  }
  func.func @transform_5(%arg0: i32, %arg1: i32) -> (i32, i32, i32) {
    %c0_i32 = arith.constant 0 : i32
    %c0_i32_0 = arith.constant 0 : i32
    return %arg0, %arg1, %c0_i32 : i32, i32, i32
  }
}

</mosaic_0001>

<bundles_post_ra>
// kernel: tpu_custom_call.1
= control target key start
LH: loop header
LB: loop body
LE: loop exit
PB: predicated region body
PF: predicated region fallthrough
CT: control target
= control target key end

     0   :  { %s993_s0 = inlined_call_operand.vmem [shape: f32[2,18,72], index: 0, kind: input, shape index: {}]   ;;  %s994_s1 = inlined_call_operand.vmem [shape: f32[9,64], index: 1, kind: input, shape index: {}]   ;;  %s995_s2 = inlined_call_operand.vmem [shape: f32[1,64], index: 2, kind: input, shape index: {}]   ;;  %s996_s3 = inlined_call_operand.vmem [shape: bf16[64,128], index: 3, kind: input, shape index: {}]   ;;  %s997_s4 = inlined_call_operand.vmem [shape: f32[1,128], index: 4, kind: input, shape index: {}]   ;;  %s998_s5 = inlined_call_operand.hbm [shape: f32[2,16,128], index: 5, kind: output, shape index: {}]  }
   0x1   :  { %999 = sst [smem:[#allocation5_spill]] %s993_s0 }
   0x2   :  { %10 = vsyncpa [#allocation3], 0 }
   0x3   :  { %12 = vsyncpa [#allocation3 + $0x1], 0  ;;  %s840_s18 = smov 0   ;;  %s842_s19 = smov 0  }
   0x4   :  { %s844_s20 = smov 0   ;;  %s846_s21 = smov 0  }
   0x5   :  { %s848_s22 = smov 0   ;;  %s850_s23 = smov 0  }
   0x6   :  { %s852_s24 = smov 0   ;;  %s854_s25 = smov 0  }
   0x7 LB: > { %s579_s26 = sadd.s32 4294967295, %s801_s25   ;;  %s580_s27 = sadd.s32 4294967294, %s801_s25   ;;  %s801_s25 = sphi %s854_s25, %s18_s25   ;;  %s797_s24 = sphi %s852_s24, %s1009_s24   ;;  %s793_s23 = sphi %s850_s23, %s1008_s23   ;;  %s789_s22 = sphi %s848_s22, %s1007_s22   ;;  %s785_s21 = sphi %s846_s21, %s1006_s21   ;;  %s781_s20 = sphi %s844_s20, %s1005_s20   ;;  %s777_s19 = sphi %s842_s19, %s1004_s19   ;;  %s773_s18 = sphi %s840_s18, %s1003_s18  }
   0x8   : > { %s27_s28 = sadd.s32 1, %s793_s23  ;;  %s30_s29 = sadd.s32 1, %s797_s24 }
   0x9   : > { %p28_p0 = scmp.ge.s32.totalorder %s27_s28, 2  ;;  %p159_p1 = scmp.ne.s32.totalorder %s781_s20, %s777_s19 }
   0xa   : > { %p160_p2 = scmp.eq.s32.totalorder %s579_s26, 3  ;;  %p165_p5 = scmp.ne.s32.totalorder %s777_s19, %s773_s18 }
   0xb   : > { %s1011_s28 = smov (%p28_p0, %s27_s28), 0  ;;  %s1013_s29 = smov (!%p28_p0, %s30_s29), %s797_s24 }
   0xc   : > { %s145_s30 = ssub.s32 %s793_s23, %s1011_s28  ;;  %p891_p3 = por %p160_p2, %p159_p1 }
   0xd   : > { %p32_p4 = scmp.ge.s32.totalorder %s1013_s29, 2  ;;  %p166_p6 = scmp.eq.s32.totalorder %s580_s27, 3 }
   0xe   : > { %p583_p7 = scmp.ge.s32.totalorder %s801_s25, 1  ;;  %p204_p9 = scmp.lt.s32.totalorder %s801_s25, 5 }
   0xf   : > { %s1015_s29 = smov (%p32_p4, %s1013_s29), 0  ;;  %p900_p8 = por %p166_p6, %p165_p5 }
  0x10   : > { %s144_s8 = ssub.s32 %s797_s24, %s1015_s29  ;;  %s149_s9 = sadd.s32 1, %s781_s20 }
  0x11   : > { %s146_s10 = sor.u32 %s145_s30, %s144_s8  ;;  %p205_p10 = pnand %p583_p7, %p204_p9 }
  0x12   : > { %p147_p11 = scmp.eq.s32.totalorder %s146_s10, 0  ;;  %s803_s14 = smov (!%p205_p10), 4  }
  0x13   : > { %208 = sbr.rel (%p205_p10) target bundleno = 560 (0x230), region = 40  ;;  %s804_s15 = smov (!%p205_p10), 8  }
  0x14   : > { %s909_s11 = scalar_select %p147_p11, %s781_s20, %s149_s9  }
  0x15   : > { %p232_p12 = scmp.lt.s32.totalorder (!%p205_p10), %s789_s22, 1  ;;  %s1002_s0 = sld [smem:[#allocation5_spill]] (!%p205_p10) }
  0x16   : > { %s586_s10 = sshll.u32 (!%p205_p10), %s785_s21, 3  ;;  %s805_s13 = smov (!%p205_p10), 124  }
  0x17   : > { %s598_s17 = sshll.u32 (!%p205_p10), %s789_s22, 1 }
  0x18   : > { %v244_v0 = vlaneseq  ;;  %v239_v2 = vld [vmem:[%s994_s1] sm:$0xff]  ;;  %v587_v13 = vld [vmem:[%s994_s1 + $0x8] ss:$0 sm:$0xff]  ;;  %s233_s26 = scalar_select %p232_p12, %s789_s22, 1  ;;  %vm258_vm0 = vcmask 1046528   ;;  %vm272_vm1 = vcmask 1045504  }
  0x19   : > { %v697_v63 = vld [vmem:[%s996_s3 + $0x18] sm:$0xff]   ;;  %vm808_vm2 = vmmov 0   ;;  %vm437_vm3 = vcmask 523264  }
  0x1a   : > { %v245_v1 = vshrl.u32 %v244_v0, 7  ;;  %s619_s27 = smul.u32 24, %s233_s26  ;;  %v807_v0 = vmov 0.0   ;;  %s501_s26 = sadd.s32 %s785_s21, %s598_s17 }
  0x1b   : > { %607 = vmatprep.subr.bf16.mxu0 %v807_v0  ;;  %615 = vmatprep.mubr.msk.bf16.mxu0 %vm808_vm2, %v807_v0 }
  0x1c   : > { %v294_v3 = vsub.s32 4, %v245_v1  ;;  %v313_v4 = vsub.s32 7, %v245_v1  ;;  %v280_v5 = vsub.s32 1, %v245_v1  ;;  %v346_v6 = vsub.s32 5, %v245_v1  ;;  %s236_s9 = scalar_lea.vmem %s1002_s0, %s619_s27  ;;  %608 = vmatpush3.bf16.msra.mxu0 %v697_v63  ;;  %s599_s27 = sshll.u32 %s501_s26, 7 }
  0x1d   : > { %v332_v11 = vsub.s32 2, %v245_v1  ;;  %s241_s12 = scalar_lea.vmem %s236_s9, %s586_s10  ;;  %v252_v14 = vsub.s32 3, %v245_v1  ;;  %v266_v16 = vsub.s32 6, %v245_v1  ;;  %v246_v19 = vsub.s32 0, %v245_v1  ;;  %609 = vmatprep.subr.bf16.mxu0 %v807_v0  ;;  %v698_v1 = vld [vmem:[%s996_s3 + $0x10] sm:$0xff]   ;;  %s809_s0 = smov [#allocation2]  }
  0x1e   : > { %v295_v7 = vrot.slane %v239_v2, %v294_v3  ;;  %v314_v8 = vrot.slane %v239_v2, %v313_v4  ;;  %v281_v9 = vrot.slane %v239_v2, %v280_v5  ;;  %v347_v10 = vrot.slane %v239_v2, %v346_v6  ;;  %v242_v17 = vld [vmem:[%s241_s12] sm:$0xff]  ;;  %v243_v18 = vld [vmem:[%s241_s12 + $0x8] sm:$0x3]  ;;  %s503_s12 = scalar_lea.hbm %s998_s5, %s599_s27  ;;  %s713_s22 = sshll.u32 %s809_s0, 4  ;;  %s714_s22 = int_to_ptr.vmem [resolvable:$false] %s713_s22 }
  0x1f   : > { %v333_v12 = vrot.slane %v239_v2, %v332_v11  ;;  %v253_v15 = vrot.slane %v239_v2, %v252_v14  ;;  %v267_v21 = vrot.slane %v239_v2, %v266_v16  ;;  %v247_v23 = vrot.slane %v239_v2, %v246_v19  ;;  %v699_v2 = vld [vmem:[%s996_s3 + $0x8] sm:$0xff]   ;;  %v700_v3 = vld [vmem:[%s996_s3] sm:$0xff]   ;;  %s715_s21 = scalar_lea.vmem %s714_s22, 256 }
  0x20   : > { %297 = vrot.lane.b32.xlu0 %v295_v7, %s803_s14  ;;  %316 = vrot.lane.b32.xlu1 %v314_v8, %s803_s14 }
  0x21   : > { %v255_v20 = vmul.f32 %v253_v15, %v243_v18  ;;  %v254_v22 = vmul.f32 %v253_v15, %v242_v17  ;;  %v269_v25 = vmul.f32 %v267_v21, %v243_v18  ;;  %v268_v27 = vmul.f32 %v267_v21, %v242_v17  ;;  %610 = vmatpush3.bf16.msra.mxu0 %v698_v1  ;;  %v588_v15 = vld [vmem:[%s995_s2] ss:$0 sm:$0xff] }
  0x22   : > { %v248_v28 = vmul.f32 %v247_v23, %v242_v17  ;;  %611 = vmatprep.subr.bf16.mxu0 %v807_v0 }
  0x23   : > { %v260_v24 = vrot.slane %v255_v20, 1  ;;  %v259_v26 = vrot.slane %v254_v22, 1  ;;  %v274_v29 = vrot.slane %v269_v25, 2  ;;  %v273_v31 = vrot.slane %v268_v27, 2 }
  0x24   : > { %283 = vrot.lane.b32.xlu0 %v281_v9, %s803_s14  ;;  %349 = vrot.lane.b32.xlu1 %v347_v10, %s804_s15  ;;  %s806_s14 = smov 120  }
  0x25   : > { %v261_v30 = vsel %vm258_vm0, %v259_v26, %v260_v24  ;;  %v275_v33 = vsel %vm272_vm1, %v273_v31, %v274_v29  ;;  %612 = vmatpush3.bf16.msra.mxu0 %v699_v2  ;;  %v590_v24 = vld [vmem:[%s997_s4] ss:$0 sm:$0xff] }
  0x26   : > { %v263_v32 = vadd.f32 %v261_v30, %v248_v28  ;;  %613 = vmatprep.subr.bf16.mxu0 %v807_v0 }
  0x28   : > { %335 = vrot.lane.b32.xlu0 %v333_v12, %s804_s15  ;;  %368 = vrot.lane.b32.xlu1 %v587_v13, %s804_s15  ;;  %v277_v34 = vadd.f32 %v275_v33, %v263_v32  ;;  %s229_s15 = sand.u32 1, %s777_s19  }
  0x29   : > { %614 = vmatpush3.bf16.msra.mxu0 %v700_v3  ;;  %s584_s16 = sshll.u32 %s229_s15, 3 }
  0x2a   : > { %s231_s30 = scalar_lea.vmem [#allocation2], %s584_s16 }
  0x2b   : > { %s505_s8 = sshll.u32 %s231_s30, 4  ;;  %s506_s8 = int_to_ptr.vmem [resolvable:$true] %s505_s8 }
  0x2c   : > { %p716_p2 = scmp.lt.s32.totalorder %s506_s8, %s714_s22 }
  0x92   : > { %v298_v35 = vpop.permute.xlu0 %297  ;;  %v317_v36 = vpop.permute.xlu1 %316 }
  0x93   : > { %v300_v37 = vmul.f32 %v298_v35, %v242_v17  ;;  %v301_v38 = vmul.f32 %v298_v35, %v243_v18  ;;  %v319_v39 = vmul.f32 %v317_v36, %v242_v17  ;;  %v320_v40 = vmul.f32 %v317_v36, %v243_v18 }
  0x95   : > { %v304_v41 = vrot.slane %v300_v37, 1  ;;  %v305_v42 = vrot.slane %v301_v38, 1  ;;  %v323_v47 = vrot.slane %v319_v39, 2  ;;  %v324_v48 = vrot.slane %v320_v40, 2 }
  0x96   : > { %v284_v43 = vpop.permute.xlu0 %283  ;;  %v350_v44 = vpop.permute.xlu1 %349 }
  0x97   : > { %v286_v45 = vmul.f32 %v284_v43, %v242_v17  ;;  %v306_v46 = vsel %vm258_vm0, %v304_v41, %v305_v42  ;;  %v352_v49 = vmul.f32 %v350_v44, %v242_v17  ;;  %v353_v50 = vmul.f32 %v350_v44, %v243_v18 }
  0x98   : > { %307 = vrot.lane.b32.xlu1 %v306_v46, %s805_s13  ;;  %v325_v58 = vsel %vm272_vm1, %v323_v47, %v324_v48 }
  0x99   : > { %288 = vrot.lane.b32.xlu0 %v286_v45, %s805_s13  ;;  %v356_v56 = vrot.slane %v352_v49, 1  ;;  %v357_v57 = vrot.slane %v353_v50, 1 }
  0x9a   : > { %v336_v51 = vpop.permute.xlu0 %335  ;;  %v369_v52 = vpop.permute.xlu1 %368 }
  0x9b   : > { %v338_v53 = vmul.f32 %v336_v51, %v242_v17  ;;  %v371_v54 = vmul.f32 %v369_v52, %v242_v17  ;;  %v372_v55 = vmul.f32 %v369_v52, %v243_v18  ;;  %v358_v62 = vsel %vm258_vm0, %v356_v56, %v357_v57 }
  0x9d   : > { %v375_v59 = vrot.slane %v371_v54, 2  ;;  %v376_v60 = vrot.slane %v372_v55, 2  ;;  %326 = vrot.lane.b32.xlu0 %v325_v58, %s805_s13  ;;  %340 = vrot.lane.b32.xlu1 %v338_v53, %s806_s14  ;;  %s490_s13 = scalar_lea.sflag [#allocation3], %s229_s15 }
  0x9f   : > { %v377_v61 = vsel %vm272_vm1, %v375_v59, %v376_v60 }
  0xa1   : > { %359 = vrot.lane.b32.xlu0 %v358_v62, %s806_s14  ;;  %378 = vrot.lane.b32.xlu1 %v377_v61, %s806_s14  ;;  %s709_s14 = scalar_lea.vmem %s506_s8, 128 }
  0xa2   : > { %p710_p13 = scmp.ne.s32.totalorder %s506_s8, %s709_s14  ;;  %p717_p4 = scmp.lt.s32.totalorder %s715_s21, %s709_s14 }
  0xa4   : > { %p711_p0 = pnand %p710_p13, %p891_p3  ;;  %p718_p5 = por %p717_p4, %p716_p2 }
  0xa6   : > { %p712_p1 = pneg %p711_p0 }
  0xa8   : > { %p719_p6 = pnand %p718_p5, %p712_p1 }
 0x10a   : > { %v308_v4 = vpop.permute.xlu1 %307 }
 0x10b   : > { %v289_v5 = vpop.permute.xlu0 %288 }
 0x10c   : > { %v291_v6 = vadd.f32 %v289_v5, %v277_v34 }
 0x10e   : > { %v310_v7 = vadd.f32 %v308_v4, %v291_v6 }
 0x10f   : > { %v327_v8 = vpop.permute.xlu0 %326  ;;  %v341_v9 = vpop.permute.xlu1 %340 }
 0x110   : > { %v329_v10 = vadd.f32 %v327_v8, %v310_v7 }
 0x112   : > { %v343_v11 = vadd.f32 %v341_v9, %v329_v10 }
 0x113   : > { %v360_v12 = vpop.permute.xlu0 %359  ;;  %v379_v13 = vpop.permute.xlu1 %378 }
 0x114   : > { %v362_v14 = vadd.f32 %v360_v12, %v343_v11 }
 0x116   : > { %v381_v16 = vadd.f32 %v379_v13, %v362_v14 }
 0x118   : > { %v389_v17 = vadd.f32 %v588_v15, %v381_v16 }
 0x11a   : > { %v589_v18 = vmul.f32 -1.442695, %v389_v17 }
 0x11c   : > { %701 = vpow2.f32 %v589_v18 }
 0x129   : > { %v702_v19 = vpop.eup %701 }
 0x12a   : > { %v393_v20 = vadd.f32 1.0, %v702_v19 }
 0x12c   : > { %703 = vrcp.f32 %v393_v20 }
 0x139   : > { %v704_v21 = vpop.eup %703 }
 0x13a   : > { %v396_v22 = vmul.f32 %v704_v21, %v389_v17 }
 0x13c   : > { %v397_v23 = vpack.c.bf16 %v396_v22, %v396_v22 }
 0x13e   : > { %616 = vmatmul.mubr.msk.bf16.vlgmr.msra.gmra.mxu0 %vm437_vm3, %v397_v23 }
 0x1fe   : > { %v475_v25 = vpop.f32.mrf.mxu0 }
 0x1ff   : > { %v476_v26 = vadd.f32 %v590_v24, %v475_v25 }
 0x200   : > { %v617_v27 = vpop.f32.mrf.mxu0 }
 0x201   : > { %v596_v28 = vmul.f32 -1.442695, %v476_v26 }
 0x202   : > { %v478_v29 = vpop.f32.mrf.mxu0 }
 0x203   : > { %705 = vpow2.f32 %v596_v28 }
 0x204   : > { %v618_v30 = vpop.f32.mrf.mxu0 }
 0x210   : > { %v706_v31 = vpop.eup %705 }
 0x211   : > { %v484_v32 = vadd.f32 1.0, %v706_v31 }
 0x213   : > { %707 = vrcp.f32 %v484_v32 }
 0x220   : > { %v708_v33 = vpop.eup %707 }
 0x221   : > { %v487_v34 = vmul.f32 %v708_v33, %v476_v26 }
 0x223   : > { %488 = vst [vmem:[%s231_s30] sm:$0xff] %v487_v34 }
 0x224   : > { %722 = shalt.err (!%p719_p6)
}
 0x225   : > { %s723_s16 = scalar_lea.hbm %s503_s12, 128  ;;  %s727_s26 = scalar_lea.hbm %s998_s5, 512 }
 0x226   : > { %p724_p7 = scmp.ne.s32.totalorder %s503_s12, %s723_s16  ;;  %p728_p11 = scmp.lt.s32.totalorder %s503_s12, %s998_s5 }
 0x227   : > { %p729_p12 = scmp.lt.s32.totalorder %s727_s26, %s723_s16 }
 0x228   : > { %p725_p9 = pnand %p724_p7, %p891_p3 }
 0x229   : > { %p730_p13 = por %p729_p12, %p728_p11 }
 0x22a   : > { %p726_p10 = pneg %p725_p9 }
 0x22c   : > { %p731_p0 = pnand %p730_p13, %p726_p10 }
 0x22e   : > { %734 = shalt.err (!%p731_p0)
}
 0x22f   : > { %620 = dma.vmem_to_hbm [thread:$0]  (%p891_p3), %s506_s8, 128, %s503_s12, %s490_s13  }
 0x230 PF: > { %p626_p1 = scmp.ge.s32.totalorder %s801_s25, 2  ;;  %s517_s0 = sand.u32 1, %s773_s18  }
 0x231   : > { %s518_s9 = scalar_lea.sflag [#allocation3], %s517_s0 }
 0x232   : > { %p623_p2 = pnand %p626_p1, %p900_p8 }
 0x234   : > { %p624_p4 = pneg %p623_p2 }
 0x236   : > { %768 = dma.done.wait (%p624_p4), %s518_s9, 128  }
 0x237   : > { %770 = vsyncadd (%p624_p4), %s518_s9, 4294967168  ;;  %s18_s25 = sadd.s32 1, %s801_s25   ;;  %s1003_s18 = smov %s777_s19 }
 0x238   : > { %p15_p5 = scmp.ge.s32.totalorder %s18_s25, 6   ;;  %s1004_s19 = smov %s781_s20 }
 0x239   : > { %s1005_s20 = smov %s909_s11  ;;  %s1006_s21 = smov %s793_s23 }
 0x23a   : > { %s1007_s22 = smov %s797_s24  ;;  %s1008_s23 = smov %s1011_s28 }
 0x23b   : > { %s1009_s24 = smov %s1015_s29  ;;  %17 = sbr.rel (!%p15_p5) target bundleno = 7 (0x7), region = 76 }
 0x240   :  { %523 = vsyncpa [#allocation3], 1 }
 0x241   :  { %525 = vsyncpa [#allocation3 + $0x1], 1 }

</bundles_post_ra>
